<compile_context>
chip_gen: v7x
topology: tpu7x:2x2x1
jax: 0.10.0
libtpu: 0.0.40
codegen_flags: <defaults>
</compile_context>

<pallas_src>
import functools

import numpy as np
import jax
import jax.numpy as jnp
from jax.experimental import pallas as pl
from jax.experimental.pallas import tpu as pltpu

LANE = 128      # vreg lane width
SUBLANE = 8     # vreg sublane width (f32)
VMEM_LIMIT_BYTES = 48 << 20   # safe on v5e/v6e (128 MiB) and v7x (64 MiB physical)
VMEM_BUDGET_BYTES = 40 << 20  # what the tile chooser is allowed to plan for


def _round_up(x: int, m: int) -> int:
    return ((x + m - 1) // m) * m


# ----------------------------------------------------------------------------- kernel
def _mlp_slab_kernel(x_ref, p_ref, o_ref, *, layer_meta):
    """Whole MLP for one batch tile.

    x_ref: (tile, in_pad0)            lane-dense activations
    p_ref: (slab_rows, slab_width)    all padded weights+biases, resident in VMEM
    o_ref: (tile, out_pad_last)       lane-dense output (multiple of 128 wide)

    layer_meta: static tuple of (row_off, in_pad, out_pad) per layer. Layer i's weight
    occupies slab rows [row_off, row_off+in_pad); its bias sits in row row_off+in_pad
    (first row of an 8-row padded stripe). All offsets are (8,128)-aligned.
    """
    n_layers = len(layer_meta)
    h = x_ref[...].astype(jnp.float32)
    for i, (row_off, in_pad, out_pad) in enumerate(layer_meta):
        w = p_ref[row_off:row_off + in_pad, :out_pad].astype(jnp.float32)
        b = p_ref[row_off + in_pad:row_off + in_pad + 1, :out_pad].astype(jnp.float32)
        h = jnp.dot(h, w, preferred_element_type=jnp.float32) + b
        if i < n_layers - 1:
            h = jnp.tanh(h)        # EUP; hidden activations only
    o_ref[...] = h.astype(o_ref.dtype)


# ---------------------------------------------------------------------------- wrapper
def _build_param_slab(weights, biases, param_dtype=jnp.float32):
    """Pack all (W, b) pairs into one lane-dense slab with zero padding."""
    slab_width = max(_round_up(w.shape[1], LANE) for w in weights)
    blocks, layer_meta, row_off = [], [], 0
    for w, b in zip(weights, biases):
        in_dim, out_dim = w.shape
        in_pad = _round_up(in_dim, LANE)
        out_pad = _round_up(out_dim, LANE)
        wp = jnp.zeros((in_pad, slab_width), param_dtype)
        wp = wp.at[:in_dim, :out_dim].set(w.astype(param_dtype))
        bflat = jnp.reshape(b, (-1,))
        bp = jnp.zeros((SUBLANE, slab_width), param_dtype)
        bp = bp.at[0, :out_dim].set(bflat.astype(param_dtype))
        blocks.extend([wp, bp])
        layer_meta.append((row_off, in_pad, out_pad))
        row_off += in_pad + SUBLANE
    slab = jnp.concatenate(blocks, axis=0)
    return slab, tuple(layer_meta)


def _pick_batch_tile(B, batch_tile, slab_bytes, in_pad0, out_pad_last, max_width,
                     elem_bytes=4):
    """Largest batch tile that (a) fits the VMEM budget next to the resident slab,
    (b) leaves >= 2 grid steps when B allows (keeps both v7x TCs busy), and
    (c) is a sublane multiple."""
    # per-row VMEM cost: double-buffered in/out tiles + a couple of compute temps.
    bytes_per_row = (2 * in_pad0 + 2 * out_pad_last + 2 * max_width) * elem_bytes
    avail = max(VMEM_BUDGET_BYTES - 2 * slab_bytes, bytes_per_row * SUBLANE)
    tile_by_vmem = max(SUBLANE, (avail // bytes_per_row) // SUBLANE * SUBLANE)
    tile_by_split = _round_up(max(1, (B + 1) // 2), SUBLANE)   # >= 2 steps when possible
    tile = min(batch_tile, tile_by_vmem, tile_by_split)
    return max(tile, SUBLANE)


def discrete_net_forward(x, weights, biases, *, batch_tile=1024,
                         param_dtype=jnp.float32):
    """x: (B, input_dim). weights[i]: (in_i, out_i). biases[i]: (out_i,) or (1, out_i).

    param_dtype=jnp.bfloat16 halves weight DMA bytes and doubles MXU rate on v6e/v7x
    (accumulation stays f32); default is f32 to match the reference bit-for-bit.
    """
    B, in_dim = x.shape
    output_dim = weights[-1].shape[1]

    slab, layer_meta = _build_param_slab(weights, biases, param_dtype)
    slab_rows, slab_width = slab.shape
    slab_bytes = slab_rows * slab_width * jnp.dtype(param_dtype).itemsize
    in_pad0 = layer_meta[0][1]
    out_pad_last = layer_meta[-1][2]
    max_width = max(out_pad for (_, _, out_pad) in layer_meta)

    eff_tile = _pick_batch_tile(B, batch_tile, slab_bytes, in_pad0, out_pad_last,
                                max_width, jnp.dtype(x.dtype).itemsize)
    B_pad = _round_up(B, eff_tile)
    n_blocks = B_pad // eff_tile

    # Zero-pad batch + feature dims -> every tile is fully defined and lane-dense.
    xp = jnp.zeros((B_pad, in_pad0), x.dtype).at[:B, :in_dim].set(x)

    kernel = functools.partial(_mlp_slab_kernel, layer_meta=layer_meta)

    flops = 2 * B_pad * sum(in_pad * out_pad for (_, in_pad, out_pad) in layer_meta)
    transcendentals = B_pad * sum(out_pad for (_, _, out_pad) in layer_meta[:-1])
    bytes_accessed = (xp.size * xp.dtype.itemsize + slab_bytes
                      + B_pad * out_pad_last * jnp.dtype(x.dtype).itemsize)

    out = pl.pallas_call(
        kernel,
        out_shape=jax.ShapeDtypeStruct((B_pad, out_pad_last), x.dtype),
        grid_spec=pltpu.PrefetchScalarGridSpec(
            num_scalar_prefetch=0,
            grid=(n_blocks,),
            in_specs=[
                pl.BlockSpec((eff_tile, in_pad0), lambda i: (i, 0)),
                # single parameter slab; same block for every grid step -> resident
                pl.BlockSpec((slab_rows, slab_width), lambda i: (0, 0)),
            ],
            out_specs=pl.BlockSpec((eff_tile, out_pad_last), lambda i: (i, 0)),
        ),
        compiler_params=pltpu.CompilerParams(
            dimension_semantics=("parallel",),
            vmem_limit_bytes=VMEM_LIMIT_BYTES,
        ),
        cost_estimate=pl.CostEstimate(flops=flops,
                                      transcendentals=transcendentals,
                                      bytes_accessed=bytes_accessed),
    )(xp, slab)

    return out[:B, :output_dim]


# ------------------------------------------------------------------------------- init
def init_discrete_net_params(key, dim, input_dim, output_dim, num_layers,
                             action_std=0.01):
    """Orthogonal init matching layer_init (std=sqrt(2) hidden, action_std final,
    zero biases). Weights stored (in, out) so the kernel computes x @ W + b."""
    sizes = [(input_dim, dim)]
    for _ in range(num_layers - 1):
        sizes.append((dim, dim))
    sizes.append((dim, output_dim))
    stds = [float(np.sqrt(2.0))] * num_layers + [float(action_std)]

    weights, biases = [], []
    keys = jax.random.split(key, len(sizes))
    for (fan_in, fan_out), std, k in zip(sizes, stds, keys):
        init = jax.nn.initializers.orthogonal(scale=std)
        weights.append(init(k, (fan_in, fan_out), jnp.float32))
        biases.append(jnp.zeros((fan_out,), dtype=jnp.float32))
    return weights, biases


def discrete_net_reference(x, weights, biases):
    h = x
    for i, (w, b) in enumerate(zip(weights, biases)):
        h = h @ w + jnp.reshape(b, (1, -1))
        if i < len(weights) - 1:
            h = jnp.tanh(h)
    return h


# ------------------------------------------------------------------------------- test
if __name__ == "__main__":
    dim = 32          # hidden width
    input_dim = 16
    output_dim = 8
    num_layers = 3
    batch = 8

    key = jax.random.PRNGKey(0)
    k_params, k_x, k_x2 = jax.random.split(key, 3)

    weights, biases = init_discrete_net_params(
        k_params, dim, input_dim, output_dim, num_layers, action_std=0.01)

    # Test 1: B == tile
    x = jax.random.normal(k_x, (batch, input_dim), dtype=jnp.float32)
    out = jax.block_until_ready(discrete_net_forward(x, weights, biases))
    ref = discrete_net_reference(x, weights, biases)
    assert out.shape == (batch, output_dim), out.shape
    assert jnp.allclose(out, ref, atol=1e-5, rtol=1e-5), "mismatch vs reference (B=8)"

    # Test 2: B not a multiple of the batch tile (exercises batch padding path)
    x2 = jax.random.normal(k_x2, (13, input_dim), dtype=jnp.float32)
    out2 = jax.block_until_ready(discrete_net_forward(x2, weights, biases))
    ref2 = discrete_net_reference(x2, weights, biases)
    assert out2.shape == (13, output_dim), out2.shape
    assert jnp.allclose(out2, ref2, atol=1e-5, rtol=1e-5), "mismatch vs reference (B=13)"

    print("KERNEL_OK")
</pallas_src>

<mosaic_0001>
module attributes {stable_mosaic.version = 11 : i64} {
  func.func @_mlp_slab_kernel(%arg0: i32, %arg1: memref<8x128xf32, #tpu.memory_space<vmem>>, %arg2: memref<544x128xf32, #tpu.memory_space<vmem>>, %arg3: memref<8x128xf32, #tpu.memory_space<vmem>>) attributes {dimension_semantics = [#tpu.dimension_semantics<parallel>], iteration_bounds = array<i64: 1>, scalar_prefetch = 0 : i64, scratch_operands = 0 : i64, tpu.core_type = #tpu.core_type<tc>, window_params = [{transform_indices = @transform_0, window_bounds = array<i64: 8, 128>}, {pipeline_mode = #tpu.pipeline_mode<synchronous>, transform_indices = @transform_1, window_bounds = array<i64: 544, 128>}, {transform_indices = @transform_2, window_bounds = array<i64: 8, 128>}]} {
    %c0 = arith.constant 0 : index
    %c0_0 = arith.constant 0 : index
    %0 = vector.load %arg1[%c0, %c0_0] : memref<8x128xf32, #tpu.memory_space<vmem>>, vector<8x128xf32>
    %c0_1 = arith.constant 0 : index
    %c0_2 = arith.constant 0 : index
    %1 = vector.load %arg2[%c0_1, %c0_2] : memref<544x128xf32, #tpu.memory_space<vmem>>, vector<128x128xf32>
    %c128 = arith.constant 128 : index
    %c0_3 = arith.constant 0 : index
    %2 = vector.load %arg2[%c128, %c0_3] : memref<544x128xf32, #tpu.memory_space<vmem>>, vector<1x128xf32>
    %cst = arith.constant dense<0.000000e+00> : vector<8x128xf32>
    %3 = tpu.matmul %0, %1, %cst {dimension_numbers = #tpu.dot_dimension_numbers<[1], [0], [0], [1], [0, 0, 1, 1], [], []>} : vector<8x128xf32>, vector<128x128xf32>, vector<8x128xf32> -> vector<8x128xf32>
    %4 = vector.broadcast %2 : vector<1x128xf32> to vector<8x128xf32>
    %5 = arith.addf %3, %4 : vector<8x128xf32>
    %6 = math.tanh %5 : vector<8x128xf32>
    %c136 = arith.constant 136 : index
    %c0_4 = arith.constant 0 : index
    %7 = vector.load %arg2[%c136, %c0_4] : memref<544x128xf32, #tpu.memory_space<vmem>>, vector<128x128xf32>
    %c264 = arith.constant 264 : index
    %c0_5 = arith.constant 0 : index
    %8 = vector.load %arg2[%c264, %c0_5] : memref<544x128xf32, #tpu.memory_space<vmem>>, vector<1x128xf32>
    %cst_6 = arith.constant dense<0.000000e+00> : vector<8x128xf32>
    %9 = tpu.matmul %6, %7, %cst_6 {dimension_numbers = #tpu.dot_dimension_numbers<[1], [0], [0], [1], [0, 0, 1, 1], [], []>} : vector<8x128xf32>, vector<128x128xf32>, vector<8x128xf32> -> vector<8x128xf32>
    %10 = vector.broadcast %8 : vector<1x128xf32> to vector<8x128xf32>
    %11 = arith.addf %9, %10 : vector<8x128xf32>
    %12 = math.tanh %11 : vector<8x128xf32>
    %c272 = arith.constant 272 : index
    %c0_7 = arith.constant 0 : index
    %13 = vector.load %arg2[%c272, %c0_7] : memref<544x128xf32, #tpu.memory_space<vmem>>, vector<128x128xf32>
    %c400 = arith.constant 400 : index
    %c0_8 = arith.constant 0 : index
    %14 = vector.load %arg2[%c400, %c0_8] : memref<544x128xf32, #tpu.memory_space<vmem>>, vector<1x128xf32>
    %cst_9 = arith.constant dense<0.000000e+00> : vector<8x128xf32>
    %15 = tpu.matmul %12, %13, %cst_9 {dimension_numbers = #tpu.dot_dimension_numbers<[1], [0], [0], [1], [0, 0, 1, 1], [], []>} : vector<8x128xf32>, vector<128x128xf32>, vector<8x128xf32> -> vector<8x128xf32>
    %16 = vector.broadcast %14 : vector<1x128xf32> to vector<8x128xf32>
    %17 = arith.addf %15, %16 : vector<8x128xf32>
    %18 = math.tanh %17 : vector<8x128xf32>
    %c408 = arith.constant 408 : index
    %c0_10 = arith.constant 0 : index
    %19 = vector.load %arg2[%c408, %c0_10] : memref<544x128xf32, #tpu.memory_space<vmem>>, vector<128x128xf32>
    %c536 = arith.constant 536 : index
    %c0_11 = arith.constant 0 : index
    %20 = vector.load %arg2[%c536, %c0_11] : memref<544x128xf32, #tpu.memory_space<vmem>>, vector<1x128xf32>
    %cst_12 = arith.constant dense<0.000000e+00> : vector<8x128xf32>
    %21 = tpu.matmul %18, %19, %cst_12 {dimension_numbers = #tpu.dot_dimension_numbers<[1], [0], [0], [1], [0, 0, 1, 1], [], []>} : vector<8x128xf32>, vector<128x128xf32>, vector<8x128xf32> -> vector<8x128xf32>
    %22 = vector.broadcast %20 : vector<1x128xf32> to vector<8x128xf32>
    %23 = arith.addf %21, %22 : vector<8x128xf32>
    %c0_13 = arith.constant 0 : index
    %c0_14 = arith.constant 0 : index
    %24 = vector.load %arg3[%c0_13, %c0_14] : memref<8x128xf32, #tpu.memory_space<vmem>>, vector<8x128xf32>
    tpu.vector_store %arg3[%c0_13, %c0_14], %23 {strides = array<i32>} : memref<8x128xf32, #tpu.memory_space<vmem>>, vector<8x128xf32>,
    return
  }
  func.func @transform_0(%arg0: i32) -> (i32, i32) {
    %c0_i32 = arith.constant 0 : i32
    %c0_i32_0 = arith.constant 0 : i32
    return %arg0, %c0_i32 : i32, i32
  }
  func.func @transform_1(%arg0: i32) -> (i32, i32) {
    %c0_i32 = arith.constant 0 : i32
    %c0_i32_0 = arith.constant 0 : i32
    %c0_i32_1 = arith.constant 0 : i32
    return %c0_i32, %c0_i32_0 : i32, i32
  }
  func.func @transform_2(%arg0: i32) -> (i32, i32) {
    %c0_i32 = arith.constant 0 : i32
    %c0_i32_0 = arith.constant 0 : i32
    return %arg0, %c0_i32 : i32, i32
  }
}

</mosaic_0001>

<bundles_post_ra>
// kernel: tpu_custom_call.1
= control target key start
LH: loop header
LB: loop body
LE: loop exit
PB: predicated region body
PF: predicated region fallthrough
CT: control target
= control target key end

     0   :  { %7 = vsyncpa [#allocation3], 0  ;;  %s923_s0 = inlined_call_operand.hbm [shape: f32[8,128], index: 0, kind: input, shape index: {}]   ;;  %s924_s1 = inlined_call_operand.hbm [shape: f32[544,128], index: 1, kind: input, shape index: {}]   ;;  %s925_s2 = inlined_call_operand.hbm [shape: f32[8,128], index: 2, kind: output, shape index: {}]  }
   0x1   :  { %8 = vsyncpa [#allocation6], 0 }
   0x2   :  { %9 = vsyncpa [#allocation4], 0  ;;  %s817_s9 = smov [#allocation2]   ;;  %s818_s11 = smov [#allocation5]  }
   0x3   :  { %s16_s10 = sshll.u32 %s817_s9, 4  ;;  %s25_s12 = sshll.u32 %s818_s11, 4  ;;  %s17_s10 = int_to_ptr.vmem [resolvable:$true] %s16_s10  ;;  %s840_s12 = int_to_ptr.vmem [resolvable:$true] %s25_s12 }
   0x4   :  { %s745_s15 = scalar_lea.hbm %s923_s0, 128 }
   0x5   :  { %p746_p0 = scmp.ne.s32.totalorder %s923_s0, %s745_s15  ;;  %p749_p1 = scmp.lt.u32.totalorder %s745_s15, %s923_s0 }
   0x7   :  { %p751_p2 = pnand %p749_p1, %p746_p0 }
   0x9   :  { %754 = shalt.err (!%p751_p2)
}
   0xa   :  { %s755_s20 = scalar_lea.vmem %s17_s10, 128  ;;  %p760_p4 = scmp.lt.s32.totalorder %s17_s10, %s17_s10 }
   0xb   :  { %p756_p3 = scmp.ne.s32.totalorder %s17_s10, %s755_s20  ;;  %p761_p5 = scmp.lt.s32.totalorder %s755_s20, %s755_s20 }
   0xd   :  { %p762_p6 = por %p761_p5, %p760_p4 }
   0xf   :  { %p763_p7 = pnand %p762_p6, %p756_p3 }
  0x11   :  { %766 = shalt.err (!%p763_p7)
}
  0x12   :  { %19 = dma.hbm_to_vmem [thread:$0]  %s923_s0, 128, %s17_s10, [#allocation3]  }
  0x13   :  { %s767_s25 = scalar_lea.hbm %s924_s1, 8704 }
  0x14   :  { %p768_p8 = scmp.ne.s32.totalorder %s924_s1, %s767_s25  ;;  %p771_p9 = scmp.lt.u32.totalorder %s767_s25, %s924_s1 }
  0x16   :  { %p773_p10 = pnand %p771_p9, %p768_p8 }
  0x18   :  { %776 = shalt.err (!%p773_p10)
}
  0x19   :  { %s777_s30 = scalar_lea.vmem %s840_s12, 8704  ;;  %p782_p12 = scmp.lt.s32.totalorder %s840_s12, %s840_s12 }
  0x1a   :  { %p778_p11 = scmp.ne.s32.totalorder %s840_s12, %s777_s30  ;;  %p783_p13 = scmp.lt.s32.totalorder %s777_s30, %s777_s30 }
  0x1c   :  { %p784_p0 = por %p783_p13, %p782_p12 }
  0x1e   :  { %p785_p1 = pnand %p784_p0, %p778_p11 }
  0x20   :  { %788 = shalt.err (!%p785_p1)
}
  0x21   :  { %s819_s0 = smov 128   ;;  %s820_s3 = smov 8  }
  0x22   :  { %31 = dma.hbm_to_vmem [thread:$0]  %s924_s1, 8704, %s840_s12, [#allocation6], %s819_s0, %s819_s0, %s820_s3  }
  0x23   :  { %811 = dma.done.wait [#allocation3], 128  }
  0x24   :  { %812 = vsyncadd [#allocation3], 4294967168 }
  0x25   :  { %813 = dma.done.wait [#allocation6], 8704  }
  0x26   :  { %814 = vsyncadd [#allocation6], 4294958592  ;;  %v821_v0 = vmov 0.0|0.0   ;;  %vm822_vm0 = vmmov 0   ;;  %v823_v1 = vmov 0.0   ;;  %v39_v2 = vld [vmem:[#allocation5] sm:$0xff] }
  0x27   :  { %635 = vmatprep.subr.bf16.mxu0 %v821_v0  ;;  %527 = vmatprep.mubr.msk.f32.mxu0 %vm822_vm0, %v823_v1  ;;  %v40_v3 = vld [vmem:[#allocation5 + $0x8] sm:$0xff]  ;;  %v41_v4 = vld [vmem:[#allocation5 + $0x10] sm:$0xff]  ;;  %v42_v6 = vld [vmem:[#allocation5 + $0x18] sm:$0xff]  ;;  %s824_s1 = smov [#allocation7]  }
  0x28   :  { %659 = vmatprep.subr.bf16.mxu1 %v821_v0  ;;  %562 = vmatprep.mubr.msk.f32.mxu1 %vm822_vm0, %v823_v1  ;;  %v636_v5 = vpack.c.bf16 %v40_v3, %v39_v2  ;;  %v639_v7 = vpack.c.bf16 %v42_v6, %v41_v4  ;;  %v43_v8 = vld [vmem:[#allocation5 + $0x20] sm:$0xff]  ;;  %v44_v9 = vld [vmem:[#allocation5 + $0x28] sm:$0xff]  ;;  %v132_v11 = vld [vmem:[#allocation5 + $0x90] sm:$0xff]  ;;  %s413_s6 = sshll.u32 %s824_s1, 4  ;;  %s414_s6 = int_to_ptr.vmem [resolvable:$true] %s413_s6 }
  0x29   :  { %v131_v10 = vld [vmem:[#allocation5 + $0x88] sm:$0xff]  ;;  %v133_v12 = vld [vmem:[#allocation5 + $0x98] sm:$0xff]  ;;  %v134_v13 = vld [vmem:[#allocation5 + $0xa0] sm:$0xff]  ;;  %v642_v14 = vpack.c.bf16 %v44_v9, %v43_v8  ;;  %s789_s7 = scalar_lea.vmem %s414_s6, 128  ;;  %p794_p3 = scmp.lt.s32.totalorder %s414_s6, %s414_s6 }
  0x2a   :  { %637 = vmatpush3.bf16.msra.mxu0 %v636_v5  ;;  %v660_v15 = vpack.c.bf16 %v132_v11, %v131_v10  ;;  %v45_v16 = vld [vmem:[#allocation5 + $0x30] sm:$0xff]  ;;  %v46_v17 = vld [vmem:[#allocation5 + $0x38] sm:$0xff]  ;;  %v663_v18 = vpack.c.bf16 %v134_v13, %v133_v12  ;;  %v135_v19 = vld [vmem:[#allocation5 + $0xa8] sm:$0xff]  ;;  %p790_p2 = scmp.ne.s32.totalorder %s414_s6, %s789_s7  ;;  %p795_p4 = scmp.lt.s32.totalorder %s789_s7, %s789_s7 }
  0x2b   :  { %638 = vmatprep.subr.bf16.mxu0 %v821_v0  ;;  %v136_v20 = vld [vmem:[#allocation5 + $0xb0] sm:$0xff]  ;;  %v645_v21 = vpack.c.bf16 %v46_v17, %v45_v16  ;;  %v47_v22 = vld [vmem:[#allocation5 + $0x40] sm:$0xff]  ;;  %v48_v23 = vld [vmem:[#allocation5 + $0x48] sm:$0xff] }
  0x2c   :  { %661 = vmatpush3.bf16.msra.mxu1 %v660_v15  ;;  %v666_v24 = vpack.c.bf16 %v136_v20, %v135_v19  ;;  %v137_v25 = vld [vmem:[#allocation5 + $0xb8] sm:$0xff]  ;;  %v138_v26 = vld [vmem:[#allocation5 + $0xc0] sm:$0xff]  ;;  %v648_v27 = vpack.c.bf16 %v48_v23, %v47_v22  ;;  %v49_v28 = vld [vmem:[#allocation5 + $0x50] sm:$0xff]  ;;  %p796_p5 = por %p795_p4, %p794_p3 }
  0x2d   :  { %662 = vmatprep.subr.bf16.mxu1 %v821_v0  ;;  %v50_v29 = vld [vmem:[#allocation5 + $0x58] sm:$0xff]  ;;  %v669_v30 = vpack.c.bf16 %v138_v26, %v137_v25  ;;  %v139_v31 = vld [vmem:[#allocation5 + $0xc8] sm:$0xff]  ;;  %v140_v32 = vld [vmem:[#allocation5 + $0xd0] sm:$0xff] }
  0x2e   :  { %640 = vmatpush3.bf16.msra.mxu0 %v639_v7  ;;  %v651_v33 = vpack.c.bf16 %v50_v29, %v49_v28  ;;  %v51_v34 = vld [vmem:[#allocation5 + $0x60] sm:$0xff]  ;;  %v52_v35 = vld [vmem:[#allocation5 + $0x68] sm:$0xff]  ;;  %v672_v36 = vpack.c.bf16 %v140_v32, %v139_v31  ;;  %v53_v38 = vld [vmem:[#allocation5 + $0x70] sm:$0xff]  ;;  %p797_p6 = pnand %p796_p5, %p790_p2 }
  0x2f   :  { %641 = vmatprep.subr.bf16.mxu0 %v821_v0  ;;  %v654_v37 = vpack.c.bf16 %v52_v35, %v51_v34  ;;  %v54_v39 = vld [vmem:[#allocation5 + $0x78] sm:$0xff]  ;;  %v142_v43 = vld [vmem:[#allocation5 + $0xe0] sm:$0xff]  ;;  %v143_v45 = vld [vmem:[#allocation5 + $0xe8] sm:$0xff] }
  0x30   :  { %664 = vmatpush3.bf16.msra.mxu1 %v663_v18  ;;  %v657_v40 = vpack.c.bf16 %v54_v39, %v53_v38  ;;  %v38_v41 = vld [vmem:[#allocation2] sm:$0xff]  ;;  %v144_v46 = vld [vmem:[#allocation5 + $0xf0] sm:$0xff]  ;;  %v146_v49 = vld [vmem:[#allocation5 + $0x100] sm:$0xff] }
  0x31   :  { %665 = vmatprep.subr.bf16.mxu1 %v821_v0  ;;  %v141_v42 = vld [vmem:[#allocation5 + $0xd8] sm:$0xff]  ;;  %v678_v47 = vpack.c.bf16 %v144_v46, %v143_v45  ;;  %v223_v51 = vld [vmem:[#allocation5 + $0x110] sm:$0xff]  ;;  %v225_v53 = vld [vmem:[#allocation5 + $0x120] sm:$0xff] }
  0x32   :  { %643 = vmatpush3.bf16.msra.mxu0 %v642_v14  ;;  %v675_v44 = vpack.c.bf16 %v142_v43, %v141_v42  ;;  %v145_v48 = vld [vmem:[#allocation5 + $0xf8] sm:$0xff]  ;;  %v226_v55 = vld [vmem:[#allocation5 + $0x128] sm:$0xff]  ;;  %v227_v57 = vld [vmem:[#allocation5 + $0x130] sm:$0xff] }
  0x33   :  { %644 = vmatprep.subr.bf16.mxu0 %v821_v0  ;;  %v681_v50 = vpack.c.bf16 %v146_v49, %v145_v48  ;;  %v224_v52 = vld [vmem:[#allocation5 + $0x118] sm:$0xff]  ;;  %v687_v56 = vpack.c.bf16 %v226_v55, %v225_v53  ;;  %v229_v60 = vld [vmem:[#allocation5 + $0x140] sm:$0xff]  ;;  %v230_v61 = vld [vmem:[#allocation5 + $0x148] sm:$0xff] }
  0x34   :  { %667 = vmatpush3.bf16.msra.mxu1 %v666_v24  ;;  %v684_v54 = vpack.c.bf16 %v224_v52, %v223_v51  ;;  %v228_v58 = vld [vmem:[#allocation5 + $0x138] sm:$0xff]  ;;  %v693_v62 = vpack.c.bf16 %v230_v61, %v229_v60  ;;  %v231_v63 = vld [vmem:[#allocation5 + $0x150] sm:$0xff]  ;;  %v423_v4 = vld [vmem:[#allocation5 + $0x80] ss:$0 sm:$0xff] }
  0x35   :  { %668 = vmatprep.subr.bf16.mxu1 %v821_v0  ;;  %v690_v59 = vpack.c.bf16 %v228_v58, %v227_v57  ;;  %v232_v2 = vld [vmem:[#allocation5 + $0x158] sm:$0xff]  ;;  %v233_v9 = vld [vmem:[#allocation5 + $0x160] sm:$0xff]  ;;  %v234_v10 = vld [vmem:[#allocation5 + $0x168] sm:$0xff] }
  0x36   :  { %646 = vmatpush3.bf16.msra.mxu0 %v645_v21  ;;  %v696_v3 = vpack.c.bf16 %v232_v2, %v231_v63  ;;  %v699_v11 = vpack.c.bf16 %v234_v10, %v233_v9  ;;  %v235_v12 = vld [vmem:[#allocation5 + $0x170] sm:$0xff]  ;;  %v236_v13 = vld [vmem:[#allocation5 + $0x178] sm:$0xff]  ;;  %v237_v15 = vld [vmem:[#allocation5 + $0x180] sm:$0xff] }
  0x37   :  { %647 = vmatprep.subr.bf16.mxu0 %v821_v0  ;;  %v702_v14 = vpack.c.bf16 %v236_v13, %v235_v12  ;;  %v238_v16 = vld [vmem:[#allocation5 + $0x188] sm:$0xff]  ;;  %v315_v18 = vld [vmem:[#allocation5 + $0x198] sm:$0xff]  ;;  %v316_v19 = vld [vmem:[#allocation5 + $0x1a0] sm:$0xff] }
  0x38   :  { %670 = vmatpush3.bf16.msra.mxu1 %v669_v30  ;;  %v705_v17 = vpack.c.bf16 %v238_v16, %v237_v15  ;;  %v317_v20 = vld [vmem:[#allocation5 + $0x1a8] sm:$0xff]  ;;  %v318_v21 = vld [vmem:[#allocation5 + $0x1b0] sm:$0xff]  ;;  %v319_v23 = vld [vmem:[#allocation5 + $0x1b8] sm:$0xff] }
  0x39   :  { %671 = vmatprep.subr.bf16.mxu1 %v821_v0  ;;  %v711_v22 = vpack.c.bf16 %v318_v21, %v317_v20  ;;  %v320_v24 = vld [vmem:[#allocation5 + $0x1c0] sm:$0xff]  ;;  %v321_v26 = vld [vmem:[#allocation5 + $0x1c8] sm:$0xff]  ;;  %v323_v29 = vld [vmem:[#allocation5 + $0x1d8] sm:$0xff] }
  0x3a   :  { %649 = vmatpush3.bf16.msra.mxu0 %v648_v27  ;;  %v714_v25 = vpack.c.bf16 %v320_v24, %v319_v23  ;;  %v322_v27 = vld [vmem:[#allocation5 + $0x1d0] sm:$0xff]  ;;  %v324_v30 = vld [vmem:[#allocation5 + $0x1e0] sm:$0xff]  ;;  %v424_v32 = vld [vmem:[#allocation5 + $0x108] ss:$0 sm:$0xff] }
  0x3b   :  { %650 = vmatprep.subr.bf16.mxu0 %v821_v0  ;;  %v717_v28 = vpack.c.bf16 %v322_v27, %v321_v26  ;;  %v720_v31 = vpack.c.bf16 %v324_v30, %v323_v29  ;;  %v326_v38 = vld [vmem:[#allocation5 + $0x1f0] sm:$0xff]  ;;  %v329_v43 = vld [vmem:[#allocation5 + $0x208] sm:$0xff]  ;;  %v426_v51 = vld [vmem:[#allocation5 + $0x218] ss:$0 sm:$0xff] }
  0x3c   :  { %673 = vmatpush3.bf16.msra.mxu1 %v672_v36  ;;  %v425_v46 = vld [vmem:[#allocation5 + $0x190] ss:$0 sm:$0xff] }
  0x3d   :  { %674 = vmatprep.subr.bf16.mxu1 %v821_v0 }
  0x3e   :  { %652 = vmatpush3.bf16.msra.mxu0 %v651_v33 }
  0x3f   :  { %653 = vmatprep.subr.bf16.mxu0 %v821_v0 }
  0x40   :  { %676 = vmatpush3.bf16.msra.mxu1 %v675_v44  ;;  %v330_v44 = vld [vmem:[#allocation5 + $0x210] sm:$0xff] }
  0x41   :  { %677 = vmatprep.subr.bf16.mxu1 %v821_v0  ;;  %v729_v45 = vpack.c.bf16 %v330_v44, %v329_v43 }
  0x42   :  { %655 = vmatpush3.bf16.msra.mxu0 %v654_v37  ;;  %v325_v37 = vld [vmem:[#allocation5 + $0x1e8] sm:$0xff] }
  0x43   :  { %656 = vmatprep.subr.bf16.mxu0 %v821_v0  ;;  %v723_v39 = vpack.c.bf16 %v326_v38, %v325_v37 }
  0x44   :  { %679 = vmatpush3.bf16.msra.mxu1 %v678_v47 }
  0x45   :  { %680 = vmatprep.subr.bf16.mxu1 %v821_v0 }
  0x46   :  { %658 = vmatpush3.bf16.msra.mxu0 %v657_v40  ;;  %v327_v40 = vld [vmem:[#allocation5 + $0x1f8] sm:$0xff] }
  0x47   :  { %683 = vmatprep.subr.bf16.mxu0 %v821_v0 }
  0x48   :  { %682 = vmatpush3.bf16.msra.mxu1 %v681_v50 }
  0x49   :  { %528 = vmatmul.mubr.f32.vlgmr.msra.gmra.mrb[0].mxu0 %v38_v41  ;;  %707 = vmatprep.subr.bf16.mxu1 %v821_v0  ;;  %v328_v41 = vld [vmem:[#allocation5 + $0x200] sm:$0xff] }
  0x4a   :  { %597 = vmatprep.mubr.msk.f32.mxu0 %vm822_vm0, %v823_v1  ;;  %685 = vmatpush3.bf16.msra.mxu0 %v684_v54  ;;  %v726_v42 = vpack.c.bf16 %v328_v41, %v327_v40 }
  0x4b   :  { %686 = vmatprep.subr.bf16.mxu0 %v821_v0 }
  0x4e   :  { %688 = vmatpush3.bf16.msra.mxu0 %v687_v56 }
  0x4f   :  { %689 = vmatprep.subr.bf16.mxu0 %v821_v0 }
  0x52   :  { %691 = vmatpush3.bf16.msra.mxu0 %v690_v59 }
  0x53   :  { %692 = vmatprep.subr.bf16.mxu0 %v821_v0 }
  0x56   :  { %694 = vmatpush3.bf16.msra.mxu0 %v693_v62 }
  0x57   :  { %695 = vmatprep.subr.bf16.mxu0 %v821_v0 }
  0x5a   :  { %697 = vmatpush3.bf16.msra.mxu0 %v696_v3 }
  0x5b   :  { %698 = vmatprep.subr.bf16.mxu0 %v821_v0 }
  0x5e   :  { %700 = vmatpush3.bf16.msra.mxu0 %v699_v11 }
  0x5f   :  { %701 = vmatprep.subr.bf16.mxu0 %v821_v0 }
  0x62   :  { %703 = vmatpush3.bf16.msra.mxu0 %v702_v14 }
  0x63   :  { %704 = vmatprep.subr.bf16.mxu0 %v821_v0 }
  0x66   :  { %706 = vmatpush3.bf16.msra.mxu0 %v705_v17 }
 0x11c   :  { %v126_v5 = vpop.f32.mrb[0].mxu0 }
 0x11d   :  { %v127_v6 = vadd.f32 %v423_v4, %v126_v5  ;;  %v529_v7 = vpop.f32.mrb[1].mxu0 }
 0x11f   :  { %739 = vtanh.f32 %v127_v6 }
 0x129   :  { %v740_v8 = vpop.eup %739 }
 0x12a   :  { %563 = vmatmul.mubr.f32.vlgmr.msra.gmra.mrb[0].mxu1 %v740_v8 }
 0x12b   :  { %632 = vmatprep.mubr.msk.f32.mxu1 %vm822_vm0, %v823_v1  ;;  %v708_v1 = vpack.c.bf16 %v316_v19, %v315_v18 }
 0x12d   :  { %709 = vmatpush3.bf16.msra.mxu1 %v708_v1 }
 0x12e   :  { %710 = vmatprep.subr.bf16.mxu1 %v821_v0 }
 0x131   :  { %712 = vmatpush3.bf16.msra.mxu1 %v711_v22 }
 0x132   :  { %713 = vmatprep.subr.bf16.mxu1 %v821_v0 }
 0x135   :  { %715 = vmatpush3.bf16.msra.mxu1 %v714_v25 }
 0x136   :  { %716 = vmatprep.subr.bf16.mxu1 %v821_v0 }
 0x139   :  { %718 = vmatpush3.bf16.msra.mxu1 %v717_v28 }
 0x13a   :  { %719 = vmatprep.subr.bf16.mxu1 %v821_v0 }
 0x13d   :  { %721 = vmatpush3.bf16.msra.mxu1 %v720_v31 }
 0x13e   :  { %722 = vmatprep.subr.bf16.mxu1 %v821_v0 }
 0x141   :  { %724 = vmatpush3.bf16.msra.mxu1 %v723_v39 }
 0x142   :  { %725 = vmatprep.subr.bf16.mxu1 %v821_v0 }
 0x145   :  { %727 = vmatpush3.bf16.msra.mxu1 %v726_v42 }
 0x146   :  { %728 = vmatprep.subr.bf16.mxu1 %v821_v0 }
 0x149   :  { %730 = vmatpush3.bf16.msra.mxu1 %v729_v45 }
 0x1fd   :  { %v218_v33 = vpop.f32.mrb[0].mxu1 }
 0x1fe   :  { %v219_v34 = vadd.f32 %v424_v32, %v218_v33  ;;  %v564_v35 = vpop.f32.mrb[1].mxu1 }
 0x200   :  { %741 = vtanh.f32 %v219_v34 }
 0x20a   :  { %v742_v36 = vpop.eup %741 }
 0x20b   :  { %598 = vmatmul.mubr.f32.vlgmr.msra.gmra.mrb[2].mxu0 %v742_v36 }
 0x2de   :  { %v310_v47 = vpop.f32.mrb[2].mxu0 }
 0x2df   :  { %v311_v48 = vadd.f32 %v425_v46, %v310_v47  ;;  %v599_v49 = vpop.f32.mrb[3].mxu0 }
 0x2e1   :  { %743 = vtanh.f32 %v311_v48 }
 0x2eb   :  { %v744_v50 = vpop.eup %743 }
 0x2ec   :  { %633 = vmatmul.mubr.f32.vlgmr.msra.gmra.mrb[2].mxu1 %v744_v50 }
 0x3bf   :  { %v402_v52 = vpop.f32.mrb[2].mxu1 }
 0x3c0   :  { %v403_v53 = vadd.f32 %v426_v51, %v402_v52  ;;  %v634_v54 = vpop.f32.mrb[3].mxu1 }
 0x3c2   :  { %406 = vst [vmem:[#allocation7] sm:$0xff] %v403_v53 }
 0x3c3   :  { %800 = shalt.err (!%p797_p6)
}
 0x3c4   :  { %s801_s10 = scalar_lea.hbm %s925_s2, 128 }
 0x3c5   :  { %p802_p7 = scmp.ne.s32.totalorder %s925_s2, %s801_s10  ;;  %p805_p8 = scmp.lt.u32.totalorder %s801_s10, %s925_s2 }
 0x3c7   :  { %p807_p9 = pnand %p805_p8, %p802_p7 }
 0x3c9   :  { %810 = shalt.err (!%p807_p9)
}
 0x3ca   :  { %416 = dma.vmem_to_hbm [thread:$0]  %s414_s6, 128, %s925_s2, [#allocation4]  }
 0x3cb   :  { %815 = dma.done.wait [#allocation4], 128  }
 0x3cc   :  { %816 = vsyncadd [#allocation4], 4294967168 }
 0x3cd   :  { %420 = vsyncpa [#allocation3], 1 }
 0x3ce   :  { %421 = vsyncpa [#allocation6], 1 }
 0x3cf   :  { %422 = vsyncpa [#allocation4], 1 }

</bundles_post_ra>
